<compile_context>
chip_gen: v7x
topology: tpu7x:2x2x1
jax: 0.10.0
libtpu: 0.0.40
codegen_flags: <defaults>
</compile_context>

<pallas_src>
import jax
import jax.numpy as jnp
from jax.experimental import pallas as pl
from jax.experimental.pallas import tpu as pltpu

TR_MAX = 512   # max relations (lanes) per grid step
NFEAT = 11     # real spatial features
KPAD = 16      # feat rows: 11 features + 1 bias-carrier + 4 zero pad
H1 = 32
H2 = 32
H1_AUG = 40    # layer-1 rows: 32 real + 1 constant-1 carrier + 7 zero pad
SLOPE = 0.1    # LeakyReLU negative slope


def _leaky(x):
    return jnp.where(x >= 0, x, SLOPE * x)


def _boxes_uo_kernel(rel_ref, bdiag_ref, w1t_ref, w2t_ref, out_ref):
    """One grid step processes `tr` relations living on the lane axis.

    rel_ref   : (2, tr) i32   row 0 = subject box id, row 1 = object box id + n_pad
    bdiag_ref : (8, 2*n_pad)  block-diag [[boxes^T, 0], [0, boxes^T]] (resident)
    w1t_ref   : (40, 16)      scaled W1^T; col 11 = b1; row 32 = carrier selector
    w2t_ref   : (32, 40)      W2^T; col 32 = b2
    out_ref   : (32, tr)
    """
    n2 = bdiag_ref.shape[1]
    tr = out_ref.shape[1]

    rel = rel_ref[...]
    # One-hot gather mask: exactly one subject row (< n_pad) and at most one
    # object row (>= n_pad) per lane.  A single MXU matmul replaces the former
    # 8 masked-sum gathers.
    box_ids = jax.lax.broadcasted_iota(jnp.int32, (n2, tr), 0)
    onehot = jnp.where(
        (box_ids == rel[0:1, :]) | (box_ids == rel[1:2, :]), 1.0, 0.0)
    # HIGHEST => fp32 contract precision; the one-hot gather reproduces the
    # coordinates (no bf16 truncation feeding the later log/divides).
    g = jnp.dot(bdiag_ref[...], onehot,
                preferred_element_type=jnp.float32,
                precision=jax.lax.Precision.HIGHEST)          # (8, tr)

    s_lo, s_hi = g[0:2], g[2:4]          # subject (x1,y1) / (x2,y2)
    o_lo, o_hi = g[4:6], g[6:8]          # object  (x1,y1) / (x2,y2)

    # Slab-vectorized feature math on (2, tr) slabs (x stacked over y).
    u_lo = jnp.minimum(s_lo, o_lo)
    u_hi = jnp.maximum(s_hi, o_hi)
    o_wh = (o_hi - o_lo) + 1.0
    u_wh = (u_hi - u_lo) + 1.0
    inv_owh = 1.0 / o_wh
    inv_uwh = 1.0 / u_wh
    dc = (u_lo + 0.5 * u_wh) - (o_lo + 0.5 * o_wh)            # u_ctr - o_ctr
    d1xy = dc * inv_owh                                       # bti(o, u)[:, :2]
    d1wh = jnp.log(u_wh * inv_owh)                            # bti(o, u)[:, 2:]
    d2xy = dc * inv_uwh                                       # -bti(u, o)[:, :2]; sign folded into W1
    area = o_wh[0:1] * o_wh[1:2]                              # ow*oh; /(w*h) folded into W1

    feat = jnp.concatenate(
        (d1xy, d1wh, d2xy,
         g[4:8],                                   # raw o box; 1/w, 1/h folded into W1
         area,
         jnp.ones((1, tr), jnp.float32),           # bias carrier (W1^T column 11)
         jnp.zeros((KPAD - NFEAT - 1, tr), jnp.float32)), axis=0)   # (16, tr)

    h = _leaky(jnp.dot(w1t_ref[...], feat,
                       preferred_element_type=jnp.float32))   # (40, tr); h[32] == 1
    out = jnp.dot(w2t_ref[...], h, preferred_element_type=jnp.float32)   # (32, tr)
    out_ref[...] = _leaky(out).astype(out_ref.dtype)


def boxes_uo_encode(boxes, rel_inds, width, height, params):
    """boxes: (N, 4) f32, rel_inds: (R, 2) int, width/height: python floats.

    params = (w1 (11,32), b1 (1,32), w2 (32,32), b2 (1,32)) with y = x @ w + b.
    Returns (R, 32) f32.
    """
    w1, b1, w2, b2 = params
    R = int(rel_inds.shape[0])
    N = int(boxes.shape[0])

    # Tile sizing: relations on lanes; split into >= 2 grid steps when possible
    # so both v7x TensorCores get work under the "parallel" grid axis.
    r128 = ((R + 127) // 128) * 128
    if r128 >= 256:
        tr = min(TR_MAX, max(128, (r128 // 256) * 128))
    else:
        tr = 128
    r_pad = ((R + tr - 1) // tr) * tr
    n_pad = max(8, ((N + 7) // 8) * 8)
    n2 = 2 * n_pad

    # Relation ids transposed; object ids offset by n_pad so one combined
    # one-hot mask addresses the block-diagonal operand.  Padded columns are
    # zero -> subject = box 0, object = all-zero box -> finite features that
    # are sliced off below.
    rel_adj = rel_inds.astype(jnp.int32).T + jnp.array([[0], [n_pad]], jnp.int32)
    relT = jnp.pad(rel_adj, ((0, 0), (0, r_pad - R)))

    # Block-diagonal boxes operand [[boxes^T, 0], [0, boxes^T]] : (8, 2*n_pad).
    boxes_t = boxes.astype(jnp.float32).T                      # (4, N)
    bdiag = jnp.zeros((8, n2), jnp.float32)
    bdiag = bdiag.at[0:4, :N].set(boxes_t)                     # subject half
    bdiag = bdiag.at[4:8, n_pad:n_pad + N].set(boxes_t)        # object half

    # Fold per-feature constants (1/w, 1/h, 1/(w*h), d2 sign) and b1 into W1^T,
    # and b2 into W2^T via a constant-1 row carried through layer 1.
    inv_w = 1.0 / float(width)
    inv_h = 1.0 / float(height)
    col_scale = jnp.array(
        [1.0, 1.0, 1.0, 1.0, -1.0, -1.0,
         inv_w, inv_h, inv_w, inv_h, inv_w * inv_h], jnp.float32)
    w1s = jnp.asarray(w1, jnp.float32) * col_scale[:, None]    # (11, 32)
    w1t = jnp.zeros((H1_AUG, KPAD), jnp.float32)
    w1t = w1t.at[:H1, :NFEAT].set(w1s.T)
    w1t = w1t.at[:H1, NFEAT].set(jnp.asarray(b1, jnp.float32).reshape(-1))
    w1t = w1t.at[H1, NFEAT].set(1.0)           # carrier selector -> h[32] = 1.0

    w2t = jnp.zeros((H2, H1_AUG), jnp.float32)
    w2t = w2t.at[:, :H1].set(jnp.asarray(w2, jnp.float32).T)
    w2t = w2t.at[:, H1].set(jnp.asarray(b2, jnp.float32).reshape(-1))

    out_t = pl.pallas_call(
        _boxes_uo_kernel,
        out_shape=jax.ShapeDtypeStruct((H2, r_pad), jnp.float32),
        grid=(r_pad // tr,),
        in_specs=[
            pl.BlockSpec((2, tr), lambda i: (0, i)),           # relation ids tile
            pl.BlockSpec((8, n2), lambda i: (0, 0)),           # block-diag boxes (resident)
            pl.BlockSpec((H1_AUG, KPAD), lambda i: (0, 0)),    # W1^T (resident)
            pl.BlockSpec((H2, H1_AUG), lambda i: (0, 0)),      # W2^T (resident)
        ],
        out_specs=pl.BlockSpec((H2, tr), lambda i: (0, i)),    # lane-dense output
        compiler_params=pltpu.CompilerParams(
            dimension_semantics=("parallel",)),
    )(relT, bdiag, w1t, w2t)

    # TODO(synk): a consumer accepting the (32, R) channel-major layout could
    # skip this final transpose entirely.
    return out_t[:, :R].T


def init_params(key):
    """Deterministic init mimicking torch.nn.Linear default (uniform +-1/sqrt(fan_in))."""
    k1, k2, k3, k4 = jax.random.split(key, 4)
    lim1 = 1.0 / jnp.sqrt(jnp.float32(NFEAT))
    w1 = jax.random.uniform(k1, (NFEAT, H1), jnp.float32, -lim1, lim1)
    b1 = jax.random.uniform(k2, (1, H1), jnp.float32, -lim1, lim1)
    lim2 = 1.0 / jnp.sqrt(jnp.float32(H1))
    w2 = jax.random.uniform(k3, (H1, H2), jnp.float32, -lim2, lim2)
    b2 = jax.random.uniform(k4, (1, H2), jnp.float32, -lim2, lim2)
    return w1, b1, w2, b2


def _ref_forward(boxes, rel_inds, width, height, params):
    """Pure-JAX mirror of the PyTorch forward for validation."""
    w1, b1, w2, b2 = params
    s = boxes[rel_inds[:, 0]]
    o = boxes[rel_inds[:, 1]]
    u = jnp.concatenate((jnp.minimum(s[:, 0:2], o[:, 0:2]),
                         jnp.maximum(s[:, 2:4], o[:, 2:4])), axis=1)

    def bti(b, g):
        ew = b[:, 2] - b[:, 0] + 1.0
        eh = b[:, 3] - b[:, 1] + 1.0
        ecx = b[:, 0] + 0.5 * ew
        ecy = b[:, 1] + 0.5 * eh
        gw = g[:, 2] - g[:, 0] + 1.0
        gh = g[:, 3] - g[:, 1] + 1.0
        gcx = g[:, 0] + 0.5 * gw
        gcy = g[:, 1] + 0.5 * gh
        return jnp.stack(((gcx - ecx) / ew, (gcy - ecy) / eh,
                          jnp.log(gw / ew), jnp.log(gh / eh)), -1)

    d1 = bti(o, u)
    d2 = bti(u, o)
    pair = jnp.concatenate((d1, d2[:, :2]), -1)
    bf = jnp.stack((o[:, 0] / width, o[:, 1] / height, o[:, 2] / width,
                    o[:, 3] / height,
                    (o[:, 2] - o[:, 0] + 1.0) * (o[:, 3] - o[:, 1] + 1.0)
                    / (width * height)), -1)
    feat = jnp.concatenate((pair, bf), -1)
    h = _leaky(feat @ w1 + b1)
    return _leaky(h @ w2 + b2)


def _make_case(key, n, r, width, height):
    k_box, k_rel = jax.random.split(key, 2)
    x1 = jax.random.uniform(k_box, (n,), jnp.float32, 0.0, width * 0.5)
    y1 = jax.random.uniform(jax.random.fold_in(k_box, 1), (n,), jnp.float32, 0.0, height * 0.5)
    wd = jax.random.uniform(jax.random.fold_in(k_box, 2), (n,), jnp.float32, 10.0, width * 0.4)
    ht = jax.random.uniform(jax.random.fold_in(k_box, 3), (n,), jnp.float32, 10.0, height * 0.4)
    boxes = jnp.stack((x1, y1, x1 + wd, y1 + ht), axis=-1)          # (n, 4) f32
    rel_inds = jax.random.randint(k_rel, (r, 2), 0, n, dtype=jnp.int32)
    return boxes, rel_inds


if __name__ == "__main__":
    key = jax.random.PRNGKey(0)
    k_case1, k_case2, k_params = jax.random.split(key, 3)
    width, height = 640.0, 480.0
    params = init_params(k_params)

    # small case (matches the module's typical tiny inputs) -> 1 grid step
    boxes, rel_inds = _make_case(k_case1, n=6, r=8, width=width, height=height)
    out = jax.block_until_ready(boxes_uo_encode(boxes, rel_inds, width, height, params))
    ref = _ref_forward(boxes, rel_inds, width, height, params)
    assert out.shape == (8, H2), out.shape
    assert jnp.allclose(out, ref, atol=1e-4, rtol=1e-4), float(jnp.abs(out - ref).max())

    # larger case exercising the multi-step grid (>= 2 steps) + padded lanes
    boxes2, rel_inds2 = _make_case(k_case2, n=20, r=600, width=width, height=height)
    out2 = jax.block_until_ready(boxes_uo_encode(boxes2, rel_inds2, width, height, params))
    ref2 = _ref_forward(boxes2, rel_inds2, width, height, params)
    assert out2.shape == (600, H2), out2.shape
    assert jnp.allclose(out2, ref2, atol=1e-4, rtol=1e-4), float(jnp.abs(out2 - ref2).max())

    print("KERNEL_OK")
</pallas_src>

<mosaic_0001>
module attributes {stable_mosaic.version = 11 : i64} {
  func.func @_boxes_uo_kernel(%arg0: i32, %arg1: memref<2x128xi32, #tpu.memory_space<vmem>>, %arg2: memref<8x16xf32, #tpu.memory_space<vmem>>, %arg3: memref<40x16xf32, #tpu.memory_space<vmem>>, %arg4: memref<32x40xf32, #tpu.memory_space<vmem>>, %arg5: memref<32x128xf32, #tpu.memory_space<vmem>>) attributes {dimension_semantics = [#tpu.dimension_semantics<parallel>], iteration_bounds = array<i64: 1>, scalar_prefetch = 0 : i64, scratch_operands = 0 : i64, tpu.core_type = #tpu.core_type<tc>, window_params = [{transform_indices = @transform_0, window_bounds = array<i64: 2, 128>}, {pipeline_mode = #tpu.pipeline_mode<synchronous>, transform_indices = @transform_1, window_bounds = array<i64: 8, 16>}, {pipeline_mode = #tpu.pipeline_mode<synchronous>, transform_indices = @transform_2, window_bounds = array<i64: 40, 16>}, {pipeline_mode = #tpu.pipeline_mode<synchronous>, transform_indices = @transform_3, window_bounds = array<i64: 32, 40>}, {transform_indices = @transform_4, window_bounds = array<i64: 32, 128>}]} {
    %c0 = arith.constant 0 : index
    %c0_0 = arith.constant 0 : index
    %0 = vector.load %arg1[%c0, %c0_0] : memref<2x128xi32, #tpu.memory_space<vmem>>, vector<2x128xi32>
    %1 = tpu.iota {dimensions = array<i32: 0>} : vector<16x128xi32>
    %2 = vector.extract_strided_slice %0 {offsets = [0, 0], sizes = [1, 128], strides = [1, 1]} : vector<2x128xi32> to vector<1x128xi32>
    %3 = vector.broadcast %2 : vector<1x128xi32> to vector<16x128xi32>
    %4 = arith.cmpi eq, %1, %3 : vector<16x128xi32>
    %5 = vector.extract_strided_slice %0 {offsets = [1, 0], sizes = [1, 128], strides = [1, 1]} : vector<2x128xi32> to vector<1x128xi32>
    %6 = vector.broadcast %5 : vector<1x128xi32> to vector<16x128xi32>
    %7 = arith.cmpi eq, %1, %6 : vector<16x128xi32>
    %8 = arith.ori %4, %7 : vector<16x128xi1>
    %cst = arith.constant 1.000000e+00 : f32
    %cst_1 = arith.constant 0.000000e+00 : f32
    %9 = vector.broadcast %cst : f32 to vector<16x128xf32>
    %10 = vector.broadcast %cst_1 : f32 to vector<16x128xf32>
    %11 = arith.select %8, %9, %10 : vector<16x128xi1>, vector<16x128xf32>
    %c0_2 = arith.constant 0 : index
    %c0_3 = arith.constant 0 : index
    %12 = vector.load %arg2[%c0_2, %c0_3] : memref<8x16xf32, #tpu.memory_space<vmem>>, vector<8x16xf32>
    %cst_4 = arith.constant dense<0.000000e+00> : vector<8x128xf32>
    %13 = tpu.matmul %12, %11, %cst_4 {dimension_numbers = #tpu.dot_dimension_numbers<[1], [0], [0], [1], [0, 0, 1, 1], [], []>, precision = #tpu.contract_precision<fp32>} : vector<8x16xf32>, vector<16x128xf32>, vector<8x128xf32> -> vector<8x128xf32>
    %14 = vector.extract_strided_slice %13 {offsets = [0, 0], sizes = [2, 128], strides = [1, 1]} : vector<8x128xf32> to vector<2x128xf32>
    %15 = vector.extract_strided_slice %13 {offsets = [2, 0], sizes = [2, 128], strides = [1, 1]} : vector<8x128xf32> to vector<2x128xf32>
    %16 = vector.extract_strided_slice %13 {offsets = [4, 0], sizes = [2, 128], strides = [1, 1]} : vector<8x128xf32> to vector<2x128xf32>
    %17 = vector.extract_strided_slice %13 {offsets = [6, 0], sizes = [2, 128], strides = [1, 1]} : vector<8x128xf32> to vector<2x128xf32>
    %18 = arith.minimumf %14, %16 : vector<2x128xf32>
    %19 = arith.maximumf %15, %17 : vector<2x128xf32>
    %20 = arith.subf %17, %16 : vector<2x128xf32>
    %cst_5 = arith.constant 1.000000e+00 : f32
    %21 = vector.broadcast %cst_5 : f32 to vector<2x128xf32>
    %22 = arith.addf %20, %21 : vector<2x128xf32>
    %23 = arith.subf %19, %18 : vector<2x128xf32>
    %cst_6 = arith.constant 1.000000e+00 : f32
    %24 = vector.broadcast %cst_6 : f32 to vector<2x128xf32>
    %25 = arith.addf %23, %24 : vector<2x128xf32>
    %cst_7 = arith.constant 1.000000e+00 : f32
    %26 = vector.broadcast %cst_7 : f32 to vector<2x128xf32>
    %27 = arith.divf %26, %22 : vector<2x128xf32>
    %cst_8 = arith.constant 1.000000e+00 : f32
    %28 = vector.broadcast %cst_8 : f32 to vector<2x128xf32>
    %29 = arith.divf %28, %25 : vector<2x128xf32>
    %cst_9 = arith.constant 5.000000e-01 : f32
    %30 = vector.broadcast %cst_9 : f32 to vector<2x128xf32>
    %31 = arith.mulf %30, %25 : vector<2x128xf32>
    %32 = arith.addf %18, %31 : vector<2x128xf32>
    %cst_10 = arith.constant 5.000000e-01 : f32
    %33 = vector.broadcast %cst_10 : f32 to vector<2x128xf32>
    %34 = arith.mulf %33, %22 : vector<2x128xf32>
    %35 = arith.addf %16, %34 : vector<2x128xf32>
    %36 = arith.subf %32, %35 : vector<2x128xf32>
    %37 = arith.mulf %36, %27 : vector<2x128xf32>
    %38 = arith.mulf %25, %27 : vector<2x128xf32>
    %39 = math.log %38 : vector<2x128xf32>
    %40 = arith.mulf %36, %29 : vector<2x128xf32>
    %41 = vector.extract_strided_slice %22 {offsets = [0, 0], sizes = [1, 128], strides = [1, 1]} : vector<2x128xf32> to vector<1x128xf32>
    %42 = vector.extract_strided_slice %22 {offsets = [1, 0], sizes = [1, 128], strides = [1, 1]} : vector<2x128xf32> to vector<1x128xf32>
    %43 = arith.mulf %41, %42 : vector<1x128xf32>
    %44 = vector.extract_strided_slice %13 {offsets = [4, 0], sizes = [4, 128], strides = [1, 1]} : vector<8x128xf32> to vector<4x128xf32>
    %cst_11 = arith.constant 1.000000e+00 : f32
    %45 = vector.broadcast %cst_11 : f32 to vector<1x128xf32>
    %cst_12 = arith.constant 0.000000e+00 : f32
    %46 = vector.broadcast %cst_12 : f32 to vector<4x128xf32>
    %47 = tpu.concatenate %37, %39, %40, %44, %43, %45, %46 in 0 : vector<2x128xf32>, vector<2x128xf32>, vector<2x128xf32>, vector<4x128xf32>, vector<1x128xf32>, vector<1x128xf32>, vector<4x128xf32> -> vector<16x128xf32>
    %c0_13 = arith.constant 0 : index
    %c0_14 = arith.constant 0 : index
    %48 = vector.load %arg3[%c0_13, %c0_14] : memref<40x16xf32, #tpu.memory_space<vmem>>, vector<40x16xf32>
    %cst_15 = arith.constant dense<0.000000e+00> : vector<40x128xf32>
    %49 = tpu.matmul %48, %47, %cst_15 {dimension_numbers = #tpu.dot_dimension_numbers<[1], [0], [0], [1], [0, 0, 1, 1], [], []>} : vector<40x16xf32>, vector<16x128xf32>, vector<40x128xf32> -> vector<40x128xf32>
    %cst_16 = arith.constant 0.000000e+00 : f32
    %50 = vector.broadcast %cst_16 : f32 to vector<40x128xf32>
    %51 = arith.cmpf oge, %49, %50 : vector<40x128xf32>
    %cst_17 = arith.constant 1.000000e-01 : f32
    %52 = vector.broadcast %cst_17 : f32 to vector<40x128xf32>
    %53 = arith.mulf %52, %49 : vector<40x128xf32>
    %54 = arith.select %51, %49, %53 : vector<40x128xi1>, vector<40x128xf32>
    %c0_18 = arith.constant 0 : index
    %c0_19 = arith.constant 0 : index
    %55 = vector.load %arg4[%c0_18, %c0_19] : memref<32x40xf32, #tpu.memory_space<vmem>>, vector<32x40xf32>
    %cst_20 = arith.constant dense<0.000000e+00> : vector<32x128xf32>
    %56 = tpu.matmul %55, %54, %cst_20 {dimension_numbers = #tpu.dot_dimension_numbers<[1], [0], [0], [1], [0, 0, 1, 1], [], []>} : vector<32x40xf32>, vector<40x128xf32>, vector<32x128xf32> -> vector<32x128xf32>
    %cst_21 = arith.constant 0.000000e+00 : f32
    %57 = vector.broadcast %cst_21 : f32 to vector<32x128xf32>
    %58 = arith.cmpf oge, %56, %57 : vector<32x128xf32>
    %cst_22 = arith.constant 1.000000e-01 : f32
    %59 = vector.broadcast %cst_22 : f32 to vector<32x128xf32>
    %60 = arith.mulf %59, %56 : vector<32x128xf32>
    %61 = arith.select %58, %56, %60 : vector<32x128xi1>, vector<32x128xf32>
    %c0_23 = arith.constant 0 : index
    %c0_24 = arith.constant 0 : index
    %62 = vector.load %arg5[%c0_23, %c0_24] : memref<32x128xf32, #tpu.memory_space<vmem>>, vector<32x128xf32>
    tpu.vector_store %arg5[%c0_23, %c0_24], %61 {strides = array<i32>} : memref<32x128xf32, #tpu.memory_space<vmem>>, vector<32x128xf32>,
    return
  }
  func.func @transform_0(%arg0: i32) -> (i32, i32) {
    %c0_i32 = arith.constant 0 : i32
    %c0_i32_0 = arith.constant 0 : i32
    return %c0_i32, %arg0 : i32, i32
  }
  func.func @transform_1(%arg0: i32) -> (i32, i32) {
    %c0_i32 = arith.constant 0 : i32
    %c0_i32_0 = arith.constant 0 : i32
    %c0_i32_1 = arith.constant 0 : i32
    return %c0_i32, %c0_i32_0 : i32, i32
  }
  func.func @transform_2(%arg0: i32) -> (i32, i32) {
    %c0_i32 = arith.constant 0 : i32
    %c0_i32_0 = arith.constant 0 : i32
    %c0_i32_1 = arith.constant 0 : i32
    return %c0_i32, %c0_i32_0 : i32, i32
  }
  func.func @transform_3(%arg0: i32) -> (i32, i32) {
    %c0_i32 = arith.constant 0 : i32
    %c0_i32_0 = arith.constant 0 : i32
    %c0_i32_1 = arith.constant 0 : i32
    return %c0_i32, %c0_i32_0 : i32, i32
  }
  func.func @transform_4(%arg0: i32) -> (i32, i32) {
    %c0_i32 = arith.constant 0 : i32
    %c0_i32_0 = arith.constant 0 : i32
    return %c0_i32, %arg0 : i32, i32
  }
}

</mosaic_0001>

<bundles_post_ra>
// kernel: tpu_custom_call.1
= control target key start
LH: loop header
LB: loop body
LE: loop exit
PB: predicated region body
PF: predicated region fallthrough
CT: control target
= control target key end

     0   :  { %v19_v0 = vlaneseq  ;;  %v1019_v1 = vmov 0.0|0.0   ;;  %vm39_vm0 = vcmask 130048   ;;  %s1141_s0 = inlined_call_operand.vmem [shape: s32[2,128], index: 0, kind: input, shape index: {}]   ;;  %s1142_s1 = inlined_call_operand.vmem [shape: f32[8,16], index: 1, kind: input, shape index: {}]   ;;  %s1143_s2 = inlined_call_operand.vmem [shape: f32[40,16], index: 2, kind: input, shape index: {}]   ;;  %s1144_s3 = inlined_call_operand.vmem [shape: f32[32,40], index: 3, kind: input, shape index: {}]   ;;  %s1145_s4 = inlined_call_operand.hbm [shape: f32[32,128], index: 4, kind: output, shape index: {}]  }
   0x1   :  { %941 = vmatprep.subr.bf16.mxu0 %v1019_v1  ;;  %v38_v2 = vld [vmem:[%s1142_s1] sm:$0xff]  ;;  %959 = vmatprep.subr.bf16.mxu1 %v1019_v1 }
   0x2   :  { %9 = vsyncpa [#allocation3], 0  ;;  %v20_v3 = vshrl.u32 %v19_v0, 7  ;;  %vm1020_vm1 = vmmov 0   ;;  %v1021_v4 = vmov 0.0   ;;  %v41_v5 = vsel %vm39_vm0, %v38_v2, 0 }
   0x3   :  { %868 = vmatprep.mubr.msk.f32.mxu0 %vm1020_vm1, %v1021_v4  ;;  %910 = vmatprep.mubr.msk.f32.mxu1 %vm1020_vm1, %v1021_v4  ;;  %v18_v6 = vld [vmem:[%s1141_s0] sm:$0x3]  ;;  %v108_v7 = vand.u32 4294901760, %v41_v5  ;;  %v1022_v21 = vmov 1.0|1.0   ;;  %vm545_vm9 = vcmask 1041408  }
   0x4   :  { %v21_v8 = vadd.s32 8, %v20_v3  ;;  %v24_v9 = vsub.s32 0, %v20_v3  ;;  %v30_v10 = vsub.s32 1, %v20_v3  ;;  %vm547_vm10 = vcmask 1043456   ;;  %s1024_s8 = smov [#allocation2]  }
   0x5   :  { %v109_v11 = vsub.f32 %v41_v5, %v108_v7  ;;  %vm552_vm11 = vcmask 1042432   ;;  %vm549_vm12 = vcmask 1045504   ;;  %vm1023_vm13 = vmmov 1   ;;  %s803_s9 = sshll.u32 %s1024_s8, 4  ;;  %s804_s9 = int_to_ptr.vmem [resolvable:$true] %s803_s9 }
   0x6   :  { %v25_v12 = vrot.slane %v18_v6, %v24_v9  ;;  %v31_v13 = vrot.slane %v18_v6, %v30_v10  ;;  %vm961_vm14 = vmpackc.low %vm547_vm10, %vm1023_vm13  ;;  %v556_v9 = vld [vmem:[%s1143_s2 + $0x8] sm:$0xff]  ;;  %v557_v10 = vld [vmem:[%s1143_s2 + $0x10] sm:$0xff]  ;;  %vm684_vm15 = vcmask 326656   ;;  %p1000_p1 = scmp.lt.s32.totalorder %s804_s9, %s804_s9 }
   0x7   :  { %v110_v14 = vand.u32 4294901760, %v109_v11 }
   0x8   :  { %vm26_vm2 = vcmp.eq.s32.totalorder %v20_v3, %v25_v12  ;;  %vm27_vm3 = vcmp.eq.s32.totalorder %v21_v8, %v25_v12  ;;  %vm32_vm4 = vcmp.eq.s32.totalorder %v20_v3, %v31_v13  ;;  %vm33_vm5 = vcmp.eq.s32.totalorder %v21_v8, %v31_v13  ;;  %v555_v8 = vld [vmem:[%s1143_s2] sm:$0xff] }
   0x9   :  { %vm34_vm6 = vmor %vm26_vm2, %vm32_vm4  ;;  %v111_v15 = vsub.f32 %v109_v11, %v110_v14  ;;  %v559_v12 = vld [vmem:[%s1143_s2 + $0x20] sm:$0xff] }
   0xa   :  { %vm35_vm7 = vmor %vm27_vm3, %vm33_vm5  ;;  %v36_v16 = vsel %vm34_vm6, 1.0, %v1021_v4  ;;  %v680_v13 = vld [vmem:[%s1144_s3] sm:$0xff] }
   0xb   :  { %v37_v17 = vsel %vm35_vm7, 1.0, %v1021_v4  ;;  %vm1065_vm8 = vmpackc.low %vm35_vm7, %vm34_vm6  ;;  %v119_v19 = vsub.f32 %v36_v16, %v36_v16  ;;  %v112_v20 = vand.u32 4294901760, %v111_v15 }
   0xc   :  { %943 = vmatpush3.bf16.msk.msra.mxu0 %vm1065_vm8, %v1022_v21  ;;  %v125_v22 = vsub.f32 %v37_v17, %v37_v17 }
   0xd   :  { %v120_v23 = vand.u32 4294901760, %v119_v19  ;;  %944 = vmatprep.subr.bf16.mxu0 %v1019_v1 }
   0xe   :  { %v126_v24 = vand.u32 4294901760, %v125_v22  ;;  %v948_v30 = vpack.c.bf16 %v125_v22, %v119_v19 }
   0xf   :  { %v121_v25 = vsub.f32 %v119_v19, %v120_v23  ;;  %869 = vmatmul.mubr.f32.vlgmr.msra.gmra.mrb[0].mxu0 %v112_v20 }
  0x10   :  { %v127_v26 = vsub.f32 %v125_v22, %v126_v24  ;;  %875 = vmatprep.mubr.msk.f32.mxu0 %vm1020_vm1, %v1021_v4  ;;  %v954_v31 = vpack.c.bf16 %v126_v24, %v120_v23 }
  0x11   :  { %v122_v27 = vand.u32 4294901760, %v121_v25 }
  0x12   :  { %v128_v28 = vand.u32 4294901760, %v127_v26 }
  0x14   :  { %v945_v29 = vpack.c.bf16 %v128_v28, %v122_v27 }
  0x16   :  { %946 = vmatpush3.bf16.msra.mxu0 %v945_v29 }
  0x17   :  { %947 = vmatprep.subr.bf16.mxu0 %v1019_v1 }
  0x19   :  { %876 = vmatmul.mubr.f32.vlgmr.msra.gmra.mrb[0].mxu0 %v108_v7 }
  0x1a   :  { %949 = vmatpush3.bf16.msra.mxu0 %v948_v30  ;;  %882 = vmatprep.mubr.msk.f32.mxu0 %vm1020_vm1, %v1021_v4 }
  0x1b   :  { %950 = vmatprep.subr.bf16.mxu0 %v1019_v1 }
  0x21   :  { %883 = vmatmul.mubr.f32.vlgmr.msra.gmra.mrb[0].mxu0 %v109_v11  ;;  %v558_v11 = vld [vmem:[%s1143_s2 + $0x18] sm:$0xff] }
  0x22   :  { %952 = vmatpush3.bf16.msk.msra.mxu0 %vm1065_vm8, %v1022_v21  ;;  %889 = vmatprep.mubr.msk.f32.mxu0 %vm1020_vm1, %v1021_v4 }
  0x23   :  { %953 = vmatprep.subr.bf16.mxu0 %v1019_v1 }
  0x29   :  { %890 = vmatmul.mubr.f32.vlgmr.msra.gmra.mrb[0].mxu0 %v110_v14 }
  0x2a   :  { %955 = vmatpush3.bf16.msra.mxu0 %v954_v31  ;;  %896 = vmatprep.mubr.msk.f32.mxu0 %vm1020_vm1, %v1021_v4 }
  0x2b   :  { %956 = vmatprep.subr.bf16.mxu0 %v1019_v1 }
  0x31   :  { %897 = vmatmul.mubr.f32.vlgmr.msra.gmra.mrb[0].mxu0 %v108_v7 }
  0x32   :  { %958 = vmatpush3.bf16.msk.msra.mxu0 %vm1065_vm8, %v1022_v21  ;;  %903 = vmatprep.mubr.msk.f32.mxu0 %vm1020_vm1, %v1021_v4 }
  0x39   :  { %904 = vmatmul.mubr.f32.vlgmr.msra.gmra.mrb[0].mxu0 %v108_v7 }
 0x10c   :  { %v486_v32 = vpop.f32.mrb[0].mxu0 }
 0x10d   :  { %v491_v33 = vrot.slane %v486_v32, 4  ;;  %v905_v34 = vpop.f32.mrb[1].mxu0  ;;  %v495_v35 = vrot.slane %v486_v32, 6 }
 0x10f   :  { %v493_v36 = vmin.f32 %v486_v32, %v491_v33  ;;  %v497_v37 = vsub.f32 %v486_v32, %v495_v35  ;;  %v494_v38 = vmax.f32 %v486_v32, %v491_v33 }
 0x111   :  { %v500_v39 = vrot.slane %v493_v36, 6  ;;  %v498_v40 = vadd.f32 1.0, %v497_v37  ;;  %v683_v37 = vld [vmem:[%s1144_s3 + $0x18] sm:$0xff] }
 0x113   :  { %v502_v41 = vsub.f32 %v494_v38, %v500_v39  ;;  %989 = vrcp.f32 %v498_v40  ;;  %v513_v43 = vmul.f32 0.5, %v498_v40  ;;  %v536_v51 = vrot.slane %v498_v40, 1 }
 0x115   :  { %v503_v42 = vadd.f32 1.0, %v502_v41  ;;  %v515_v46 = vrot.slane %v513_v43, 2  ;;  %v538_v56 = vmul.f32 %v536_v51, %v498_v40 }
 0x117   :  { %991 = vrcp.f32 %v503_v42  ;;  %v508_v44 = vmul.f32 0.5, %v503_v42  ;;  %v517_v50 = vadd.f32 %v515_v46, %v486_v32  ;;  %v543_v60 = vrot.slane %v538_v56, 4 }
 0x119   :  { %v510_v48 = vrot.slane %v508_v44, 2  ;;  %v519_v54 = vrot.slane %v517_v50, 4  ;;  %v551_v1 = vsel %vm545_vm9, %v495_v35, %v543_v60 }
 0x11a   :  { %v553_v6 = vsel %vm552_vm11, %v551_v1, 1.0 }
 0x11b   :  { %v512_v53 = vadd.f32 %v510_v48, %v493_v36  ;;  %v682_v36 = vld [vmem:[%s1144_s3 + $0x10] sm:$0xff] }
 0x11d   :  { %v990_v45 = vpop.eup %989  ;;  %v521_v57 = vsub.f32 %v512_v53, %v519_v54 }
 0x11e   :  { %v526_v47 = vrot.slane %v990_v45, 4  ;;  %v523_v58 = vrot.slane %v990_v45, 6 }
 0x120   :  { %v528_v49 = vmul.f32 %v526_v47, %v503_v42  ;;  %v525_v62 = vmul.f32 %v523_v58, %v521_v57 }
 0x121   :  { %v992_v52 = vpop.eup %991 }
 0x122   :  { %993 = vlog2.f32 %v528_v49  ;;  %v532_v55 = vrot.slane %v992_v52, 2 }
 0x124   :  { %v534_v59 = vmul.f32 %v532_v55, %v521_v57 }
 0x126   :  { %v540_v0 = vrot.slane %v534_v59, 4 }
 0x12c   :  { %v994_v61 = vpop.eup %993 }
 0x12d   :  { %v530_v63 = vmul.f32 0.6931472, %v994_v61 }
 0x12f   :  { %v546_v2 = vsel %vm545_vm9, %v525_v62, %v530_v63 }
 0x130   :  { %v548_v3 = vsel %vm547_vm10, %v546_v2, %v540_v0 }
 0x131   :  { %v550_v5 = vsel %vm549_vm12, %v548_v3, %v495_v35  ;;  %v681_v35 = vld [vmem:[%s1144_s3 + $0x8] sm:$0xff]  ;;  %s995_s3 = scalar_lea.vmem %s804_s9, 512 }
 0x132   :  { %v960_v7 = vpack.c.bf16 %v553_v6, %v550_v5  ;;  %p996_p0 = scmp.ne.s32.totalorder %s804_s9, %s995_s3  ;;  %p1001_p2 = scmp.lt.s32.totalorder %s995_s3, %s995_s3 }
 0x134   :  { %962 = vmatpush3.bf16.msk.msra.mxu1 %vm961_vm14, %v960_v7  ;;  %p1002_p3 = por %p1001_p2, %p1000_p1 }
 0x136   :  { %p1003_p4 = pnand %p1002_p3, %p996_p0 }
 0x137   :  { %911 = vmatmul.mubr.msk.f32.vlgmr.msra.gmra.mrb[0].mxu1 %vm39_vm0, %v555_v8 }
 0x138   :  { %913 = vmatprep.mubr.msk.f32.mxu1 %vm1020_vm1, %v1021_v4 }
 0x13b   :  { %914 = vmatmul.mubr.msk.f32.gmra.mrb[2].mxu1 %vm39_vm0, %v556_v9 }
 0x13c   :  { %916 = vmatprep.mubr.msk.f32.mxu1 %vm1020_vm1, %v1021_v4 }
 0x13f   :  { %917 = vmatmul.mubr.msk.f32.gmra.mrb[4].mxu1 %vm39_vm0, %v557_v10 }
 0x140   :  { %919 = vmatprep.mubr.msk.f32.mxu1 %vm1020_vm1, %v1021_v4 }
 0x143   :  { %920 = vmatmul.mubr.msk.f32.gmra.mrb[6].mxu1 %vm39_vm0, %v558_v11 }
 0x144   :  { %922 = vmatprep.mubr.msk.f32.mxu1 %vm1020_vm1, %v1021_v4 }
 0x147   :  { %923 = vmatmul.mubr.msk.f32.gmra.mrb[8].mxu1 %vm39_vm0, %v559_v12 }
 0x148   :  { %935 = vmatprep.mubr.msk.f32.mxu1 %vm684_vm15, %v680_v13 }
 0x20a   :  { %v641_v14 = vpop.f32.mrb[0].mxu1 }
 0x20b   :  { %v912_v15 = vpop.f32.mrb[1].mxu1  ;;  %v670_v16 = vmul.f32 0.1, %v641_v14  ;;  %vm665_vm2 = vcmp.ge.f32.partialorder %v641_v14, 0.0 }
 0x20d   :  { %v675_v19 = vsel %vm665_vm2, %v641_v14, %v670_v16 }
 0x20e   :  { %v646_v17 = vpop.f32.mrb[2].mxu1 }
 0x20f   :  { %vm666_vm3 = vcmp.ge.f32.partialorder %v646_v17, 0.0  ;;  %v671_v4 = vmul.f32 0.1, %v646_v17  ;;  %v915_v18 = vpop.f32.mrb[3].mxu1 }
 0x211   :  { %v676_v20 = vsel %vm666_vm3, %v646_v17, %v671_v4 }
 0x212   :  { %v651_v21 = vpop.f32.mrb[4].mxu1  ;;  %v963_v22 = vpack.c.bf16 %v676_v20, %v675_v19 }
 0x213   :  { %v918_v23 = vpop.f32.mrb[5].mxu1  ;;  %v672_v24 = vmul.f32 0.1, %v651_v21  ;;  %vm667_vm0 = vcmp.ge.f32.partialorder %v651_v21, 0.0 }
 0x214   :  { %964 = vmatprep.subr.bf16.mxu1 %v963_v22 }
 0x215   :  { %966 = vmatpush3.bf16.msra.mxu1 %v963_v22  ;;  %v677_v28 = vsel %vm667_vm0, %v651_v21, %v672_v24 }
 0x216   :  { %v656_v25 = vpop.f32.mrb[6].mxu1 }
 0x217   :  { %vm668_vm1 = vcmp.ge.f32.partialorder %v656_v25, 0.0  ;;  %v673_v26 = vmul.f32 0.1, %v656_v25  ;;  %v921_v27 = vpop.f32.mrb[7].mxu1 }
 0x219   :  { %v678_v29 = vsel %vm668_vm1, %v656_v25, %v673_v26 }
 0x21a   :  { %v661_v30 = vpop.f32.mrb[8].mxu1  ;;  %v967_v31 = vpack.c.bf16 %v678_v29, %v677_v28 }
 0x21b   :  { %vm669_vm4 = vcmp.ge.f32.partialorder %v661_v30, 0.0  ;;  %v674_v32 = vmul.f32 0.1, %v661_v30  ;;  %v924_v33 = vpop.f32.mrb[9].mxu1 }
 0x21c   :  { %968 = vmatprep.subr.bf16.mxu1 %v967_v31 }
 0x21d   :  { %970 = vmatpush3.bf16.msra.mxu1 %v967_v31  ;;  %v679_v34 = vsel %vm669_vm4, %v661_v30, %v674_v32 }
 0x21e   :  { %933 = vmatprep.subr.mxu1 %v679_v34 }
 0x221   :  { %934 = vmatpush3.msra.mxu1 %v679_v34 }
 0x222   :  { %936 = vmatmul.mubr.msk.f32.vlgmr.msra.gmra.mrb[10].mxu1 %vm684_vm15, %v681_v35 }
 0x223   :  { %938 = vmatprep.mubr.msk.f32.mxu1 %vm684_vm15, %v682_v36 }
 0x226   :  { %939 = vmatmul.mubr.msk.f32.gmra.mrb[12].mxu1 %vm684_vm15, %v683_v37 }
 0x2f5   :  { %v937_v38 = vpop.f32.mrb[10].mxu1 }
 0x2f6   :  { %vm783_vm5 = vcmp.ge.f32.partialorder %v937_v38, 0.0  ;;  %v787_v39 = vmul.f32 0.1, %v937_v38  ;;  %v763_v40 = vpop.f32.mrb[11].mxu1 }
 0x2f7   :  { %vm782_vm6 = vcmp.ge.f32.partialorder %v763_v40, 0.0  ;;  %v786_v41 = vmul.f32 0.1, %v763_v40 }
 0x2f8   :  { %v791_v42 = vsel %vm783_vm5, %v937_v38, %v787_v39 }
 0x2f9   :  { %795 = vst [vmem:[#allocation2 + $0x8] sm:$0xff] %v791_v42  ;;  %v790_v43 = vsel %vm782_vm6, %v763_v40, %v786_v41  ;;  %v940_v44 = vpop.f32.mrb[12].mxu1 }
 0x2fa   :  { %794 = vst [vmem:[#allocation2] sm:$0xff] %v790_v43  ;;  %vm785_vm7 = vcmp.ge.f32.partialorder %v940_v44, 0.0  ;;  %v789_v45 = vmul.f32 0.1, %v940_v44  ;;  %v773_v46 = vpop.f32.mrb[13].mxu1 }
 0x2fb   :  { %vm784_vm8 = vcmp.ge.f32.partialorder %v773_v46, 0.0  ;;  %v788_v47 = vmul.f32 0.1, %v773_v46 }
 0x2fc   :  { %v793_v48 = vsel %vm785_vm7, %v940_v44, %v789_v45 }
 0x2fd   :  { %797 = vst [vmem:[#allocation2 + $0x18] sm:$0xff] %v793_v48  ;;  %v792_v49 = vsel %vm784_vm8, %v773_v46, %v788_v47 }
 0x2fe   :  { %796 = vst [vmem:[#allocation2 + $0x10] sm:$0xff] %v792_v49 }
 0x2ff   :  { %1006 = shalt.err (!%p1003_p4)
}
 0x300   :  { %s1007_s12 = scalar_lea.hbm %s1145_s4, 512 }
 0x301   :  { %p1008_p5 = scmp.ne.s32.totalorder %s1145_s4, %s1007_s12  ;;  %p1011_p6 = scmp.lt.u32.totalorder %s1007_s12, %s1145_s4 }
 0x303   :  { %p1013_p7 = pnand %p1011_p6, %p1008_p5 }
 0x305   :  { %1016 = shalt.err (!%p1013_p7)
}
 0x306   :  { %s1025_s17 = smov 128   ;;  %s1026_s18 = smov 8  }
 0x307   :  { %809 = dma.vmem_to_hbm [thread:$0]  %s804_s9, 512, %s1145_s4, [#allocation3], %s1025_s17, %s1025_s17, %s1026_s18  }
 0x308   :  { %1017 = dma.done.wait [#allocation3], 512  }
 0x309   :  { %1018 = vsyncadd [#allocation3], 4294966784 }
 0x30a   :  { %813 = vsyncpa [#allocation3], 1 }

</bundles_post_ra>
